<compile_context>
chip_gen: v7x
topology: tpu7x:2x2x1
jax: 0.10.0
libtpu: 0.0.40
codegen_flags: <defaults>
</compile_context>

<pallas_src>
import functools
import math

import jax
import jax.numpy as jnp
import numpy as np
from jax.experimental import pallas as pl
from jax.experimental.pallas import tpu as pltpu


def _round_up(x, m):
    return (x + m - 1) // m * m


def _detect_vmem_cap_bytes():
    """~85% of physical VMEM for this generation (54 MiB v7x, 108 MiB v5e/v6e)."""
    try:
        info = pltpu.get_tpu_info()
        cap = getattr(info, "vmem_capacity_bytes", None)
        if cap:
            return int(cap * 0.85)
    except Exception:
        pass
    return 48 << 20  # safe fallback on every generation (v7x has 64 MiB physical)


_VMEM_CAP = _detect_vmem_cap_bytes()


# ------------------------- Pallas kernel (factory over static geometry) -------------------
def _conv_block_kernel_factory(KH, KW, dilation, W_row, C_in_r, L, T):
    """Per-(batch, row-tile) kernel.

    Refs:
      w_ref : (C_out, KH*KW*C_in_r)  bf16  resident, folded-K weight (tap-major, channel-minor)
      b_ref : (C_out, 1)             f32   resident
      x_ref : (1, C_in_r, FLAT)      bf16  whole flattened zero-padded image of batch n
      o_ref : (1, C_out, L)          bf16  one lane tile (tile_h output rows x W_row wide cols)
      k_scr : (KH*KW*C_in_r, L)      bf16  VMEM scratch: stacked im2col operand for this tile
    """

    def kernel(w_ref, b_ref, x_ref, o_ref, k_scr):
        if T == 1:
            base = 0                                               # fully static slicing
        else:
            base = pl.multiple_of(pl.program_id(1) * L, 128)       # L % 128 == 0 by construction

        # Implicit im2col: stack the KH*KW shifted (C_in_r, L) tap slices into one (K, L)
        # operand resident in VMEM scratch.  Loads come straight from the input ref (3 vld
        # slots), stores are sublane-aligned (C_in_r % 8 == 0, L % 128 == 0).
        for kh in range(KH):
            for kw in range(KW):
                off = kh * dilation * W_row + kw * dilation
                row0 = (kh * KW + kw) * C_in_r
                if T == 1:
                    sl = x_ref[0, :, pl.ds(off, L)]                # static lane slice
                else:
                    sl = x_ref[0, :, pl.ds(base + off, L)]         # dynamic lane slice
                k_scr[row0:row0 + C_in_r, :] = sl

        # Single MXU matmul per tile: (C_out, K) @ (K, L), K = KH*KW*C_in_r, f32 accumulation.
        acc = jnp.dot(w_ref[...], k_scr[...], preferred_element_type=jnp.float32)
        acc = acc + b_ref[...]                                     # bias broadcast over lanes
        o_ref[0] = jnp.maximum(acc, 0.0).astype(o_ref.dtype)       # ReLU, cast to bf16 at store

    return kernel


# ------------------------- wrapper --------------------------------------------------------
@functools.partial(jax.jit,
                   static_argnames=("stride", "padding", "conv_padding", "dilation"))
def conv2d_block_forward(x, weight, bias, *, stride=1, padding=0, conv_padding=0, dilation=1):
    """Forward of Conv2dBlock: ZeroPad2d(padding) -> Conv2d(..., padding=conv_padding) -> ReLU.

    x      : (N, C_in, H, W)       float32, NCHW
    weight : (C_out, C_in, KH, KW) float32  (PyTorch OIHW convention)
    bias   : (C_out,)              float32
    Returns bf16 NCHW output (bf16 MXU operands, f32 accumulation).
    """
    if stride != 1:
        # TODO(synk): stride > 1 needs a space-to-depth phase decomposition of the padded input
        # before the implicit-im2col kernel; only stride == 1 is implemented here.
        raise NotImplementedError("Pallas Conv2dBlock kernel currently requires stride == 1")

    N, C_in, H, W = x.shape
    C_out, _, KH, KW = weight.shape

    pt = padding + conv_padding                 # ZeroPad2d then Conv2d's own zero padding
    H_pad, W_pad = H + 2 * pt, W + 2 * pt
    H_out = (H_pad - dilation * (KH - 1) - 1) // stride + 1
    W_out = (W_pad - dilation * (KW - 1) - 1) // stride + 1

    # ---- lane-tile geometry (all static) ----
    if W_pad >= 96:
        W_row = _round_up(W_pad, 128)           # kh tap offsets 128-lane aligned (KW phases only)
    else:
        W_row = _round_up(W_pad, 16)            # narrow image: avoid 128-pad HBM inflation
    m = 128 // math.gcd(W_row, 128)             # row granularity so lane tiles are 128-aligned
    target_lanes = 2048                         # fatter per-step work (grid-overhead-bound regime)
    tile_h = m * max(1, -(-target_lanes // (m * W_row)))
    tile_h = min(tile_h, _round_up(H_out, m))
    T = -(-H_out // tile_h)                     # number of row tiles per batch element
    L = tile_h * W_row                          # output lane tile, multiple of 128
    halo_rows = (KH - 1) * dilation
    spill_rows = -(-((KW - 1) * dilation) // W_row)   # column halo may spill into next flat row
    H_ext = T * tile_h + halo_rows + spill_rows       # >= H_pad for stride == 1
    FLAT = H_ext * W_row

    # Sublane-aligned channel count (scratch stores land on 8-row boundaries).
    C_in_r = _round_up(C_in, 8)
    Kdim = KH * KW * C_in_r

    # Static invariant: every tap slice of every tile stays inside the flat padded image.
    assert (T - 1) * L + halo_rows * W_row + (KW - 1) * dilation + L <= FLAT

    # ---- glue: single fused cast + zero pad into wide-row layout (no im2col buffer in HBM) ----
    # NOTE: the whole padded image of one batch element stays resident in VMEM; for very large
    # C_in*H*W inputs this block would need row tiling with an explicit halo DMA instead.
    xw = jnp.pad(x.astype(jnp.bfloat16),
                 ((0, 0), (0, C_in_r - C_in),
                  (pt, pt + (H_ext - H_pad)),
                  (pt, pt + (W_row - W_pad))))
    x_flat = xw.reshape(N, C_in_r, FLAT)                           # bf16 MXU operand

    # ---- glue: folded-K weights (tap-major, channel-minor) + bias column ----
    w_pad = jnp.pad(weight, ((0, 0), (0, C_in_r - C_in), (0, 0), (0, 0)))
    w_fold = jnp.transpose(w_pad, (0, 2, 3, 1)).reshape(C_out, Kdim).astype(jnp.bfloat16)
    b_col = bias.reshape(C_out, 1).astype(jnp.float32)

    kernel = _conv_block_kernel_factory(KH, KW, dilation, W_row, C_in_r, L, T)

    # ---- VMEM budget: double-buffered blocks + resident weights/bias + im2col scratch ----
    vmem_need = (2 * (C_in_r * FLAT * 2            # input block (bf16), double-buffered
                      + C_out * L * 2              # output block (bf16), double-buffered
                      + C_out * Kdim * 2           # weights (bf16)
                      + C_out * 4)                 # bias (f32)
                 + Kdim * L * 2)                   # stacked im2col scratch (bf16)
    if vmem_need + (2 << 20) > _VMEM_CAP:
        # TODO(synk): fall back to halo-window tiling (memory_space=pl.ANY + manual DMA) for
        # images whose whole padded plane does not fit the per-generation VMEM budget.
        raise ValueError(
            f"Conv2dBlock Pallas kernel needs ~{vmem_need >> 20} MiB VMEM but only "
            f"{_VMEM_CAP >> 20} MiB is budgeted on this TPU generation; input too large for "
            "the whole-image-resident fast path.")
    vmem_limit = int(min(max(vmem_need + (4 << 20), 32 << 20), _VMEM_CAP))

    out_wide = pl.pallas_call(
        kernel,
        out_shape=jax.ShapeDtypeStruct((N, C_out, T * L), jnp.bfloat16),
        grid_spec=pltpu.PrefetchScalarGridSpec(
            num_scalar_prefetch=0,
            grid=(N, T),
            in_specs=[
                pl.BlockSpec((C_out, Kdim), lambda n, t: (0, 0)),          # folded weights, resident
                pl.BlockSpec((C_out, 1), lambda n, t: (0, 0)),             # bias, resident
                pl.BlockSpec((1, C_in_r, FLAT), lambda n, t: (n, 0, 0)),   # padded image of n
            ],
            out_specs=pl.BlockSpec((1, C_out, L), lambda n, t: (n, 0, t)), # lane-dense bf16 tile
            scratch_shapes=[pltpu.VMEM((Kdim, L), jnp.bfloat16)],          # stacked im2col operand
        ),
        compiler_params=pltpu.CompilerParams(
            dimension_semantics=("parallel", "parallel"),
            vmem_limit_bytes=vmem_limit,
        ),
    )(w_fold, b_col, x_flat)

    # Drop the width padding / extra rows and return NCHW.
    # TODO(synk): a fused consumer could take the wide-row (N, C_out, T*tile_h, W_row) layout
    # directly and skip this crop copy.
    out = out_wide.reshape(N, C_out, T * tile_h, W_row)[:, :, :H_out, :W_out]
    return out


# ------------------------- pure-JAX reference ----------------------------------------------
def _reference(x, weight, bias, *, stride, padding, conv_padding, dilation):
    pad_total = padding + conv_padding
    y = jax.lax.conv_general_dilated(
        x, weight,
        window_strides=(stride, stride),
        padding=[(pad_total, pad_total), (pad_total, pad_total)],
        rhs_dilation=(dilation, dilation),
        dimension_numbers=("NCHW", "OIHW", "NCHW"),
    )
    y = y + bias.reshape(1, -1, 1, 1)
    return jnp.maximum(y, 0.0)


# ------------------------- main -------------------------------------------------------------
if __name__ == "__main__":
    # Conv2dBlock(input_dim=4, output_dim=8, kernel_size=3, stride=1, padding=1,
    #             conv_padding=0, dilation=1, norm='none', activation='relu',
    #             pad_type='zero', transpose=False)
    N, C_in, H, W = 2, 4, 16, 16
    C_out, KH, KW = 8, 3, 3
    stride, padding, conv_padding, dilation = 1, 1, 0, 1

    key = jax.random.PRNGKey(0)
    kx, kwt, kb = jax.random.split(key, 3)
    x = jax.random.normal(kx, (N, C_in, H, W), dtype=jnp.float32)
    fan_in = C_in * KH * KW
    bound = 1.0 / np.sqrt(fan_in)
    weight = jax.random.uniform(kwt, (C_out, C_in, KH, KW), jnp.float32, -bound, bound)
    bias = jax.random.uniform(kb, (C_out,), jnp.float32, -bound, bound)

    out = conv2d_block_forward(
        x, weight, bias,
        stride=stride, padding=padding, conv_padding=conv_padding, dilation=dilation,
    )
    out = jax.block_until_ready(out)

    ref = _reference(
        x, weight, bias,
        stride=stride, padding=padding, conv_padding=conv_padding, dilation=dilation,
    )
    # bf16 MXU operands + bf16 output with f32 accumulation -> looser tolerance vs f32 reference.
    np.testing.assert_allclose(np.asarray(out, dtype=np.float32), np.asarray(ref),
                               rtol=3e-2, atol=3e-2)

    print("KERNEL_OK")
</pallas_src>

<mosaic_0001>
module attributes {stable_mosaic.version = 11 : i64} {
  func.func @kernel(%arg0: i32, %arg1: i32, %arg2: memref<8x72xbf16, #tpu.memory_space<vmem>>, %arg3: memref<8x1xf32, #tpu.memory_space<vmem>>, %arg4: memref<1x8x608xbf16, #tpu.memory_space<vmem>>, %arg5: memref<1x8x512xbf16, #tpu.memory_space<vmem>>, %arg6: memref<72x512xbf16, #tpu.memory_space<vmem>>) attributes {dimension_semantics = [#tpu.dimension_semantics<parallel>, #tpu.dimension_semantics<parallel>], iteration_bounds = array<i64: 2, 1>, scalar_prefetch = 0 : i64, scratch_operands = 1 : i64, tpu.core_type = #tpu.core_type<tc>, window_params = [{pipeline_mode = #tpu.pipeline_mode<synchronous>, transform_indices = @transform_0, window_bounds = array<i64: 8, 72>}, {pipeline_mode = #tpu.pipeline_mode<synchronous>, transform_indices = @transform_1, window_bounds = array<i64: 8, 1>}, {transform_indices = @transform_2, window_bounds = array<i64: 1, 8, 608>}, {transform_indices = @transform_3, window_bounds = array<i64: 1, 8, 512>}]} {
    %c0 = arith.constant 0 : index
    %c0_0 = arith.constant 0 : index
    %c0_1 = arith.constant 0 : index
    %0 = vector.load %arg4[%c0, %c0_0, %c0_1] : memref<1x8x608xbf16, #tpu.memory_space<vmem>>, vector<1x8x512xbf16>
    %1 = vector.shape_cast %0 : vector<1x8x512xbf16> to vector<8x512xbf16>
    %c0_2 = arith.constant 0 : index
    %c0_3 = arith.constant 0 : index
    %2 = vector.load %arg6[%c0_2, %c0_3] : memref<72x512xbf16, #tpu.memory_space<vmem>>, vector<8x512xbf16>
    tpu.vector_store %arg6[%c0_2, %c0_3], %1 {strides = array<i32>} : memref<72x512xbf16, #tpu.memory_space<vmem>>, vector<8x512xbf16>,
    %c0_4 = arith.constant 0 : index
    %c0_5 = arith.constant 0 : index
    %c1 = arith.constant 1 : index
    %3 = vector.load %arg4[%c0_4, %c0_5, %c1] : memref<1x8x608xbf16, #tpu.memory_space<vmem>>, vector<1x8x512xbf16>
    %4 = vector.shape_cast %3 : vector<1x8x512xbf16> to vector<8x512xbf16>
    %c8 = arith.constant 8 : index
    %c0_6 = arith.constant 0 : index
    %5 = vector.load %arg6[%c8, %c0_6] : memref<72x512xbf16, #tpu.memory_space<vmem>>, vector<8x512xbf16>
    tpu.vector_store %arg6[%c8, %c0_6], %4 {strides = array<i32>} : memref<72x512xbf16, #tpu.memory_space<vmem>>, vector<8x512xbf16>,
    %c0_7 = arith.constant 0 : index
    %c0_8 = arith.constant 0 : index
    %c2 = arith.constant 2 : index
    %6 = vector.load %arg4[%c0_7, %c0_8, %c2] : memref<1x8x608xbf16, #tpu.memory_space<vmem>>, vector<1x8x512xbf16>
    %7 = vector.shape_cast %6 : vector<1x8x512xbf16> to vector<8x512xbf16>
    %c16 = arith.constant 16 : index
    %c0_9 = arith.constant 0 : index
    %8 = vector.load %arg6[%c16, %c0_9] : memref<72x512xbf16, #tpu.memory_space<vmem>>, vector<8x512xbf16>
    tpu.vector_store %arg6[%c16, %c0_9], %7 {strides = array<i32>} : memref<72x512xbf16, #tpu.memory_space<vmem>>, vector<8x512xbf16>,
    %c0_10 = arith.constant 0 : index
    %c0_11 = arith.constant 0 : index
    %c32 = arith.constant 32 : index
    %9 = vector.load %arg4[%c0_10, %c0_11, %c32] : memref<1x8x608xbf16, #tpu.memory_space<vmem>>, vector<1x8x512xbf16>
    %10 = vector.shape_cast %9 : vector<1x8x512xbf16> to vector<8x512xbf16>
    %c24 = arith.constant 24 : index
    %c0_12 = arith.constant 0 : index
    %11 = vector.load %arg6[%c24, %c0_12] : memref<72x512xbf16, #tpu.memory_space<vmem>>, vector<8x512xbf16>
    tpu.vector_store %arg6[%c24, %c0_12], %10 {strides = array<i32>} : memref<72x512xbf16, #tpu.memory_space<vmem>>, vector<8x512xbf16>,
    %c0_13 = arith.constant 0 : index
    %c0_14 = arith.constant 0 : index
    %c33 = arith.constant 33 : index
    %12 = vector.load %arg4[%c0_13, %c0_14, %c33] : memref<1x8x608xbf16, #tpu.memory_space<vmem>>, vector<1x8x512xbf16>
    %13 = vector.shape_cast %12 : vector<1x8x512xbf16> to vector<8x512xbf16>
    %c32_15 = arith.constant 32 : index
    %c0_16 = arith.constant 0 : index
    %14 = vector.load %arg6[%c32_15, %c0_16] : memref<72x512xbf16, #tpu.memory_space<vmem>>, vector<8x512xbf16>
    tpu.vector_store %arg6[%c32_15, %c0_16], %13 {strides = array<i32>} : memref<72x512xbf16, #tpu.memory_space<vmem>>, vector<8x512xbf16>,
    %c0_17 = arith.constant 0 : index
    %c0_18 = arith.constant 0 : index
    %c34 = arith.constant 34 : index
    %15 = vector.load %arg4[%c0_17, %c0_18, %c34] : memref<1x8x608xbf16, #tpu.memory_space<vmem>>, vector<1x8x512xbf16>
    %16 = vector.shape_cast %15 : vector<1x8x512xbf16> to vector<8x512xbf16>
    %c40 = arith.constant 40 : index
    %c0_19 = arith.constant 0 : index
    %17 = vector.load %arg6[%c40, %c0_19] : memref<72x512xbf16, #tpu.memory_space<vmem>>, vector<8x512xbf16>
    tpu.vector_store %arg6[%c40, %c0_19], %16 {strides = array<i32>} : memref<72x512xbf16, #tpu.memory_space<vmem>>, vector<8x512xbf16>,
    %c0_20 = arith.constant 0 : index
    %c0_21 = arith.constant 0 : index
    %c64 = arith.constant 64 : index
    %18 = vector.load %arg4[%c0_20, %c0_21, %c64] : memref<1x8x608xbf16, #tpu.memory_space<vmem>>, vector<1x8x512xbf16>
    %19 = vector.shape_cast %18 : vector<1x8x512xbf16> to vector<8x512xbf16>
    %c48 = arith.constant 48 : index
    %c0_22 = arith.constant 0 : index
    %20 = vector.load %arg6[%c48, %c0_22] : memref<72x512xbf16, #tpu.memory_space<vmem>>, vector<8x512xbf16>
    tpu.vector_store %arg6[%c48, %c0_22], %19 {strides = array<i32>} : memref<72x512xbf16, #tpu.memory_space<vmem>>, vector<8x512xbf16>,
    %c0_23 = arith.constant 0 : index
    %c0_24 = arith.constant 0 : index
    %c65 = arith.constant 65 : index
    %21 = vector.load %arg4[%c0_23, %c0_24, %c65] : memref<1x8x608xbf16, #tpu.memory_space<vmem>>, vector<1x8x512xbf16>
    %22 = vector.shape_cast %21 : vector<1x8x512xbf16> to vector<8x512xbf16>
    %c56 = arith.constant 56 : index
    %c0_25 = arith.constant 0 : index
    %23 = vector.load %arg6[%c56, %c0_25] : memref<72x512xbf16, #tpu.memory_space<vmem>>, vector<8x512xbf16>
    tpu.vector_store %arg6[%c56, %c0_25], %22 {strides = array<i32>} : memref<72x512xbf16, #tpu.memory_space<vmem>>, vector<8x512xbf16>,
    %c0_26 = arith.constant 0 : index
    %c0_27 = arith.constant 0 : index
    %c66 = arith.constant 66 : index
    %24 = vector.load %arg4[%c0_26, %c0_27, %c66] : memref<1x8x608xbf16, #tpu.memory_space<vmem>>, vector<1x8x512xbf16>
    %25 = vector.shape_cast %24 : vector<1x8x512xbf16> to vector<8x512xbf16>
    %c64_28 = arith.constant 64 : index
    %c0_29 = arith.constant 0 : index
    %26 = vector.load %arg6[%c64_28, %c0_29] : memref<72x512xbf16, #tpu.memory_space<vmem>>, vector<8x512xbf16>
    tpu.vector_store %arg6[%c64_28, %c0_29], %25 {strides = array<i32>} : memref<72x512xbf16, #tpu.memory_space<vmem>>, vector<8x512xbf16>,
    %c0_30 = arith.constant 0 : index
    %c0_31 = arith.constant 0 : index
    %27 = vector.load %arg2[%c0_30, %c0_31] : memref<8x72xbf16, #tpu.memory_space<vmem>>, vector<8x72xbf16>
    %c0_32 = arith.constant 0 : index
    %c0_33 = arith.constant 0 : index
    %28 = vector.load %arg6[%c0_32, %c0_33] : memref<72x512xbf16, #tpu.memory_space<vmem>>, vector<72x512xbf16>
    %cst = arith.constant dense<0.000000e+00> : vector<8x512xf32>
    %29 = tpu.matmul %27, %28, %cst {dimension_numbers = #tpu.dot_dimension_numbers<[1], [0], [0], [1], [0, 0, 1, 1], [], []>} : vector<8x72xbf16>, vector<72x512xbf16>, vector<8x512xf32> -> vector<8x512xf32>
    %c0_34 = arith.constant 0 : index
    %c0_35 = arith.constant 0 : index
    %30 = vector.load %arg3[%c0_34, %c0_35] : memref<8x1xf32, #tpu.memory_space<vmem>>, vector<8x1xf32>
    %31 = vector.broadcast %30 : vector<8x1xf32> to vector<8x512xf32>
    %32 = arith.addf %29, %31 : vector<8x512xf32>
    %cst_36 = arith.constant 0.000000e+00 : f32
    %33 = vector.broadcast %cst_36 : f32 to vector<8x512xf32>
    %34 = arith.maximumf %32, %33 : vector<8x512xf32>
    %35 = arith.truncf %34 : vector<8x512xf32> to vector<8x512xbf16>
    %c0_37 = arith.constant 0 : index
    %c0_38 = arith.constant 0 : index
    %c0_39 = arith.constant 0 : index
    %36 = vector.load %arg5[%c0_37, %c0_38, %c0_39] : memref<1x8x512xbf16, #tpu.memory_space<vmem>>, vector<1x8x512xbf16>
    %37 = vector.shape_cast %36 : vector<1x8x512xbf16> to vector<8x512xbf16>
    %38 = vector.shape_cast %35 : vector<8x512xbf16> to vector<1x8x512xbf16>
    tpu.vector_store %arg5[%c0_37, %c0_38, %c0_39], %38 {strides = array<i32>} : memref<1x8x512xbf16, #tpu.memory_space<vmem>>, vector<1x8x512xbf16>,
    return
  }
  func.func @transform_0(%arg0: i32, %arg1: i32) -> (i32, i32) {
    %c0_i32 = arith.constant 0 : i32
    %c0_i32_0 = arith.constant 0 : i32
    %c0_i32_1 = arith.constant 0 : i32
    return %c0_i32, %c0_i32_0 : i32, i32
  }
  func.func @transform_1(%arg0: i32, %arg1: i32) -> (i32, i32) {
    %c0_i32 = arith.constant 0 : i32
    %c0_i32_0 = arith.constant 0 : i32
    %c0_i32_1 = arith.constant 0 : i32
    return %c0_i32, %c0_i32_0 : i32, i32
  }
  func.func @transform_2(%arg0: i32, %arg1: i32) -> (i32, i32, i32) {
    %c0_i32 = arith.constant 0 : i32
    %c0_i32_0 = arith.constant 0 : i32
    %c0_i32_1 = arith.constant 0 : i32
    return %arg0, %c0_i32, %c0_i32_0 : i32, i32, i32
  }
  func.func @transform_3(%arg0: i32, %arg1: i32) -> (i32, i32, i32) {
    %c0_i32 = arith.constant 0 : i32
    %c0_i32_0 = arith.constant 0 : i32
    return %arg0, %c0_i32, %arg1 : i32, i32, i32
  }
}

</mosaic_0001>

<bundles_post_ra>
// kernel: conv2d_block_forward.1
= control target key start
LH: loop header
LB: loop body
LE: loop exit
PB: predicated region body
PF: predicated region fallthrough
CT: control target
= control target key end

     0   :  { %s836_s12 = smov 0   ;;  %s838_s13 = smov 0   ;;  %s947_s0 = inlined_call_operand.vmem [shape: bf16[8,72], index: 0, kind: input, shape index: {}]   ;;  %s948_s1 = inlined_call_operand.vmem [shape: f32[8,1], index: 1, kind: input, shape index: {}]   ;;  %s949_s2 = inlined_call_operand.vmem [shape: bf16[2,8,608], index: 2, kind: input, shape index: {}]   ;;  %s950_s3 = inlined_call_operand.vmem [shape: bf16[2,8,512], index: 3, kind: output, shape index: {}]  }
   0x1   :  { %s840_s14 = smov 0  }
   0x2 LB: > { %s25_s15 = sadd.s32 1, %s801_s13  ;;  %p713_p0 = scmp.ge.s32.totalorder %s805_s14, 1  ;;  %s805_s14 = sphi %s840_s14, %s13_s14   ;;  %s801_s13 = sphi %s838_s13, %s952_s13   ;;  %s797_s12 = sphi %s836_s12, %s951_s12  }
   0x3   : > { %p27_p1 = scmp.ge.s32.totalorder %s25_s15, 2  ;;  %p151_p2 = scmp.lt.s32.totalorder %s805_s14, 3 }
   0x5   : > { %s954_s15 = smov (%p27_p1, %s25_s15), 0  ;;  %p152_p3 = pnand %p713_p0, %p151_p2 }
   0x6   : > { %p179_p4 = scmp.lt.s32.totalorder (!%p152_p3), %s797_s12, 1  ;;  %s807_s20 = smov (!%p152_p3), 127   ;;  %v814_v9 = vmov (!%p152_p3), 0   ;;  %v411_v11 = vld [vmem:[%s948_s1] sm:$0xff] (!%p152_p3)  ;;  %vm214_vm0 = vcmask (!%p152_p3), 1043456   ;;  %vm216_vm1 = vcmask (!%p152_p3), 1039360  }
   0x7   : > { %155 = sbr.rel (%p152_p3) target bundleno = 408 (0x198), region = 32  ;;  %s808_s21 = smov (!%p152_p3), 126   ;;  %556 = vmatprep.mubr.bf16.mxu0 (!%p152_p3), %v814_v9  ;;  %597 = vmatprep.mubr.bf16.mxu1 (!%p152_p3), %v814_v9  ;;  %vm240_vm2 = vcmask (!%p152_p3), 1031168   ;;  %vm264_vm3 = vcmask (!%p152_p3), 785408   ;;  %vm288_vm4 = vcmask (!%p152_p3), 777216   ;;  %vm312_vm5 = vcmask (!%p152_p3), 769024  }
   0x8   : > { %s809_s22 = smov (!%p152_p3), 96   ;;  %s810_s23 = smov (!%p152_p3), 95   ;;  %782 = vset.pattern.permute.xlu0 (!%p152_p3), %v814_v9  ;;  %vm336_vm6 = vcmask (!%p152_p3), 523264   ;;  %vm360_vm7 = vcmask (!%p152_p3), 515072   ;;  %vm384_vm8 = vcmask (!%p152_p3), 506880   ;;  %vm507_vm9 = vcmask (!%p152_p3), 588800  }
   0x9   : > { %s811_s24 = smov (!%p152_p3), 94   ;;  %s812_s25 = smov (!%p152_p3), 64  }
   0xa   : > { %s813_s26 = smov (!%p152_p3), 63   ;;  %s815_s27 = smov (!%p152_p3), 62  }
   0xe   : > { %s956_s12 = smov (!%p179_p4, %s797_s12), 1 }
   0xf   : > { %s748_s16 = smul.u32 20, %s956_s12  ;;  %s745_s5 = sshll.u32 %s956_s12, 4 }
  0x10   : > { %s192_s8 = scalar_lea.vmem %s950_s3, %s745_s5 }
  0x11   : > { %s860_s19 = scalar_lea.vmem %s949_s2, %s748_s16 }
  0x12   : > { %v201_v0 = vld [vmem:[%s860_s19 + $0x10] sm:$0xf]  ;;  %v864_v1 = vld [vmem:[%s860_s19] sm:$0xff]  ;;  %v868_v2 = vld [vmem:[%s860_s19 + $0x8] sm:$0xff] }
  0x13   : > { %209 = vrot.lane.b32.xlu1 %v201_v0, %s807_s20  ;;  %205 = vrot.lane.b32.xlu0 %v864_v1, %s807_s20  ;;  %v226_v3 = vld [vmem:[%s860_s19 + $0x10] sm:$0xf] }
  0x14   : > { %v250_v4 = vld [vmem:[%s860_s19 + $0x10] sm:$0xf] }
  0x15   : > { %v274_v5 = vld [vmem:[%s860_s19 + $0x10] sm:$0xf] }
  0x16   : > { %v298_v6 = vld [vmem:[%s860_s19 + $0x10] sm:$0xf] }
  0x17   : > { %230 = vrot.lane.b32.xlu1 %v864_v1, %s808_s21  ;;  %207 = vrot.lane.b32.xlu0 %v868_v2, %s807_s20  ;;  %v322_v7 = vld [vmem:[%s860_s19 + $0x10] sm:$0xf] }
  0x18   : > { %v346_v8 = vld [vmem:[%s860_s19 + $0x10] sm:$0xf] }
  0x19   : > { %v370_v10 = vld [vmem:[%s860_s19 + $0x10] sm:$0xf] }
  0x1b   : > { %234 = vrot.lane.b32.xlu1 %v226_v3, %s808_s21  ;;  %232 = vrot.lane.b32.xlu0 %v868_v2, %s808_s21 }
  0x1f   : > { %256 = vrot.lane.b32.xlu1 %v868_v2, %s809_s22  ;;  %254 = vrot.lane.b32.xlu0 %v864_v1, %s809_s22 }
  0x23   : > { %278 = vrot.lane.b32.xlu1 %v864_v1, %s810_s23  ;;  %258 = vrot.lane.b32.xlu0 %v250_v4, %s809_s22 }
  0x27   : > { %282 = vrot.lane.b32.xlu1 %v274_v5, %s810_s23  ;;  %280 = vrot.lane.b32.xlu0 %v868_v2, %s810_s23 }
  0x2b   : > { %304 = vrot.lane.b32.xlu1 %v868_v2, %s811_s24  ;;  %302 = vrot.lane.b32.xlu0 %v864_v1, %s811_s24 }
  0x2f   : > { %326 = vrot.lane.b32.xlu1 %v864_v1, %s812_s25  ;;  %306 = vrot.lane.b32.xlu0 %v298_v6, %s811_s24 }
  0x33   : > { %330 = vrot.lane.b32.xlu1 %v322_v7, %s812_s25  ;;  %328 = vrot.lane.b32.xlu0 %v868_v2, %s812_s25 }
  0x37   : > { %352 = vrot.lane.b32.xlu1 %v868_v2, %s813_s26  ;;  %350 = vrot.lane.b32.xlu0 %v864_v1, %s813_s26 }
  0x3b   : > { %374 = vrot.lane.b32.xlu1 %v864_v1, %s815_s27  ;;  %354 = vrot.lane.b32.xlu0 %v346_v8, %s813_s26 }
  0x3f   : > { %378 = vrot.lane.b32.xlu1 %v370_v10, %s815_s27  ;;  %376 = vrot.lane.b32.xlu0 %v868_v2, %s815_s27 }
  0x43   : > { %414 = vperm.xlu0 %782, %v411_v11  }
  0x85   : > { %v210_v12 = vpop.permute.xlu1 %209  ;;  %v206_v13 = vpop.permute.xlu0 %205 }
  0x86   : > { %v213_v16 = vrot.slane %v210_v12, 4  ;;  %v211_v17 = vrot.slane %v206_v13, 4 }
  0x89   : > { %v231_v14 = vpop.permute.xlu1 %230  ;;  %v208_v15 = vpop.permute.xlu0 %207 }
  0x8a   : > { %v212_v18 = vrot.slane %v208_v15, 4  ;;  %v236_v30 = vrot.slane %v231_v14, 4 }
  0x8c   : > { %v215_v19 = vsel %vm214_vm0, %v211_v17, %v212_v18  ;;  %v218_v20 = vsel %vm214_vm0, %v212_v18, %v213_v16 }
  0x8d   : > { %v235_v21 = vpop.permute.xlu1 %234  ;;  %v233_v22 = vpop.permute.xlu0 %232  ;;  %v217_v23 = vsel %vm216_vm1, %v206_v13, %v215_v19  ;;  %v219_v24 = vsel %vm216_vm1, %v208_v15, %v218_v20 }
  0x8e   : > { %v237_v25 = vrot.slane %v233_v22, 4  ;;  %v718_v26 = vcombine.high %v864_v1, %v217_v23  ;;  %v720_v27 = vcombine.high %v868_v2, %v219_v24  ;;  %v717_v28 = vcombine.low %v864_v1, %v217_v23 }
  0x8f   : > { %v719_v29 = vcombine.low %v868_v2, %v219_v24  ;;  %v238_v33 = vrot.slane %v235_v21, 4 }
  0x90   : > { %524 = vmatprep.subr.bf16.mxu0 %v718_v26  ;;  %565 = vmatprep.subr.bf16.mxu1 %v720_v27  ;;  %v239_v35 = vsel %vm214_vm0, %v236_v30, %v237_v25 }
  0x91   : > { %v257_v31 = vpop.permute.xlu1 %256  ;;  %v255_v32 = vpop.permute.xlu0 %254  ;;  %525 = vmatpush1.bf16.msra.mxu0 %v717_v28  ;;  %566 = vmatpush1.bf16.msra.mxu1 %v719_v29  ;;  %v241_v38 = vsel %vm240_vm2, %v231_v14, %v239_v35  ;;  %v242_v42 = vsel %vm214_vm0, %v237_v25, %v238_v33 }
  0x92   : > { %v261_v34 = vrot.slane %v257_v31, 4  ;;  %v260_v36 = vrot.slane %v255_v32, 4  ;;  %v243_v47 = vsel %vm240_vm2, %v233_v22, %v242_v42 }
  0x94   : > { %v263_v37 = vsel %vm214_vm0, %v260_v36, %v261_v34 }
  0x95   : > { %v265_v39 = vsel %vm264_vm3, %v255_v32, %v263_v37  ;;  %v279_v40 = vpop.permute.xlu1 %278  ;;  %v259_v41 = vpop.permute.xlu0 %258 }
  0x96   : > { %v721_v43 = vcombine.low %v241_v38, %v265_v39  ;;  %v722_v44 = vcombine.high %v241_v38, %v265_v39  ;;  %v262_v45 = vrot.slane %v259_v41, 4  ;;  %v284_v54 = vrot.slane %v279_v40, 4 }
  0x98   : > { %v266_v46 = vsel %vm214_vm0, %v261_v34, %v262_v45  ;;  %526 = vmatprep.subr.bf16.mxu0 %v722_v44 }
  0x99   : > { %v283_v48 = vpop.permute.xlu1 %282  ;;  %v281_v49 = vpop.permute.xlu0 %280  ;;  %527 = vmatpush1.bf16.msra.mxu0 %v721_v43  ;;  %v267_v50 = vsel %vm264_vm3, %v257_v31, %v266_v46 }
  0x9a   : > { %v285_v51 = vrot.slane %v281_v49, 4  ;;  %v724_v52 = vcombine.high %v243_v47, %v267_v50  ;;  %v723_v53 = vcombine.low %v243_v47, %v267_v50  ;;  %v286_v57 = vrot.slane %v283_v48, 4  ;;  %v392_v50 = vld [vmem:[%s947_s0] sm:$0xf] }
  0x9c   : > { %567 = vmatprep.subr.bf16.mxu1 %v724_v52  ;;  %v287_v59 = vsel %vm214_vm0, %v284_v54, %v285_v51  ;;  %v290_v2 = vsel %vm214_vm0, %v285_v51, %v286_v57 }
  0x9d   : > { %v305_v55 = vpop.permute.xlu1 %304  ;;  %v303_v56 = vpop.permute.xlu0 %302  ;;  %568 = vmatpush1.bf16.msra.mxu1 %v723_v53  ;;  %v289_v62 = vsel %vm288_vm4, %v279_v40, %v287_v59  ;;  %v291_v7 = vsel %vm288_vm4, %v281_v49, %v290_v2 }
  0x9e   : > { %v309_v58 = vrot.slane %v305_v55, 4  ;;  %v308_v60 = vrot.slane %v303_v56, 4 }
  0xa0   : > { %v311_v61 = vsel %vm214_vm0, %v308_v60, %v309_v58 }
  0xa1   : > { %v313_v63 = vsel %vm312_vm5, %v303_v56, %v311_v61  ;;  %v327_v0 = vpop.permute.xlu1 %326  ;;  %v307_v1 = vpop.permute.xlu0 %306 }
  0xa2   : > { %v725_v3 = vcombine.low %v289_v62, %v313_v63  ;;  %v726_v4 = vcombine.high %v289_v62, %v313_v63  ;;  %v310_v5 = vrot.slane %v307_v1, 4  ;;  %v332_v14 = vrot.slane %v327_v0, 4 }
  0xa4   : > { %v314_v6 = vsel %vm214_vm0, %v309_v58, %v310_v5  ;;  %528 = vmatprep.subr.bf16.mxu0 %v726_v4 }
  0xa5   : > { %v331_v8 = vpop.permute.xlu1 %330  ;;  %v329_v9 = vpop.permute.xlu0 %328  ;;  %529 = vmatpush1.bf16.msra.mxu0 %v725_v3  ;;  %v315_v10 = vsel %vm312_vm5, %v305_v55, %v314_v6 }
  0xa6   : > { %v333_v11 = vrot.slane %v329_v9, 4  ;;  %v728_v12 = vcombine.high %v291_v7, %v315_v10  ;;  %v727_v13 = vcombine.low %v291_v7, %v315_v10  ;;  %v334_v17 = vrot.slane %v331_v8, 4 }
  0xa8   : > { %569 = vmatprep.subr.bf16.mxu1 %v728_v12  ;;  %v335_v19 = vsel %vm214_vm0, %v332_v14, %v333_v11  ;;  %v338_v26 = vsel %vm214_vm0, %v333_v11, %v334_v17 }
  0xa9   : > { %v353_v15 = vpop.permute.xlu1 %352  ;;  %v351_v16 = vpop.permute.xlu0 %350  ;;  %570 = vmatpush1.bf16.msra.mxu1 %v727_v13  ;;  %v337_v22 = vsel %vm336_vm6, %v327_v0, %v335_v19  ;;  %v339_v31 = vsel %vm336_vm6, %v329_v9, %v338_v26 }
  0xaa   : > { %v357_v18 = vrot.slane %v353_v15, 4  ;;  %v356_v20 = vrot.slane %v351_v16, 4 }
  0xac   : > { %v359_v21 = vsel %vm214_vm0, %v356_v20, %v357_v18 }
  0xad   : > { %v361_v23 = vsel %vm360_vm7, %v351_v16, %v359_v21  ;;  %v375_v24 = vpop.permute.xlu1 %374  ;;  %v355_v25 = vpop.permute.xlu0 %354 }
  0xae   : > { %v729_v27 = vcombine.low %v337_v22, %v361_v23  ;;  %v730_v28 = vcombine.high %v337_v22, %v361_v23  ;;  %v358_v29 = vrot.slane %v355_v25, 4  ;;  %v380_v32 = vrot.slane %v375_v24, 4 }
  0xb0   : > { %v362_v30 = vsel %vm214_vm0, %v357_v18, %v358_v29  ;;  %530 = vmatprep.subr.bf16.mxu0 %v730_v28 }
  0xb1   : > { %v379_v33 = vpop.permute.xlu1 %378  ;;  %v377_v34 = vpop.permute.xlu0 %376  ;;  %531 = vmatpush1.bf16.msra.mxu0 %v729_v27  ;;  %v363_v35 = vsel %vm360_vm7, %v353_v15, %v362_v30 }
  0xb2   : > { %v382_v36 = vrot.slane %v379_v33, 4  ;;  %v381_v37 = vrot.slane %v377_v34, 4  ;;  %v732_v38 = vcombine.high %v339_v31, %v363_v35  ;;  %v731_v39 = vcombine.low %v339_v31, %v363_v35 }
  0xb4   : > { %v383_v40 = vsel %vm214_vm0, %v380_v32, %v381_v37  ;;  %v386_v41 = vsel %vm214_vm0, %v381_v37, %v382_v36  ;;  %571 = vmatprep.subr.bf16.mxu1 %v732_v38 }
  0xb5   : > { %v385_v42 = vsel %vm384_vm8, %v375_v24, %v383_v40  ;;  %v387_v43 = vsel %vm384_vm8, %v377_v34, %v386_v41  ;;  %572 = vmatpush1.bf16.msra.mxu1 %v731_v39 }
  0xb6   : > { %v734_v44 = vcombine.high %v385_v42, %v385_v42  ;;  %v735_v45 = vcombine.low %v387_v43, %v387_v43  ;;  %v736_v46 = vcombine.high %v387_v43, %v387_v43  ;;  %v733_v47 = vcombine.low %v385_v42, %v385_v42 }
  0xb8   : > { %737 = vmatprep.subr.msk.bf16.mxu0 %vm214_vm0, %v734_v44  ;;  %739 = vmatprep.subr.msk.bf16.mxu1 %vm214_vm0, %v736_v46  ;;  %v513_v48 = vsel %vm214_vm0, %v733_v47, 0  ;;  %v519_v49 = vsel %vm214_vm0, %v735_v45, 0 }
  0xb9   : > { %533 = vmatpush1.bf16.msra.mxu0 %v513_v48  ;;  %574 = vmatpush1.bf16.msra.mxu1 %v519_v49 }
  0xbc   : > { %738 = vmatmul.mubr.msk.bf16.vlgmr.msra.gmra.mrb[0].mxu0 %vm507_vm9, %v392_v50  ;;  %740 = vmatmul.mubr.msk.bf16.vlgmr.msra.gmra.mrb[0].mxu1 %vm507_vm9, %v392_v50 }
  0xc2   : > { %v415_v51 = vpop.permute.xlu0 %414 }
 0x18f   : > { %v558_v52 = vpop.f32.mrb[0].mxu0  ;;  %v599_v53 = vpop.f32.mrb[0].mxu1 }
 0x190   : > { %v559_v54 = vadd.f32 %v558_v52, %v415_v51  ;;  %v600_v55 = vadd.f32 %v599_v53, %v415_v51  ;;  %v560_v56 = vpop.f32.mrb[1].mxu0  ;;  %v601_v57 = vpop.f32.mrb[1].mxu1 }
 0x191   : > { %v561_v58 = vadd.f32 %v560_v56, %v415_v51  ;;  %v602_v59 = vadd.f32 %v601_v57, %v415_v51  ;;  %v562_v60 = vpop.f32.mrb[2].mxu0  ;;  %v603_v61 = vpop.f32.mrb[2].mxu1 }
 0x192   : > { %v606_v62 = vmax.f32 %v559_v54, 0.0  ;;  %v608_v63 = vmax.f32 %v600_v55, 0.0  ;;  %v563_v0 = vpop.f32.mrb[3].mxu0  ;;  %v604_v1 = vpop.f32.mrb[3].mxu1 }
 0x193   : > { %v607_v2 = vmax.f32 %v561_v58, 0.0  ;;  %v609_v3 = vmax.f32 %v602_v59, 0.0 }
 0x195   : > { %v746_v4 = vpack.c.bf16 %v607_v2, %v606_v62  ;;  %v747_v5 = vpack.c.bf16 %v609_v3, %v608_v63 }
 0x197   : > { %626 = vst [vmem:[%s192_s8] sm:$0xff] %v746_v4  ;;  %627 = vst [vmem:[%s192_s8 + $0x8] sm:$0xff] %v747_v5 }
 0x198 PF: > { %s13_s14 = sadd.s32 1, %s805_s14   ;;  %s951_s12 = smov %s801_s13 }
 0x199   : > { %p10_p5 = scmp.ge.s32.totalorder %s13_s14, 4   ;;  %s952_s13 = smov %s954_s15 }
 0x19b   :  { %12 = sbr.rel (!%p10_p5) target bundleno = 2 (0x2), region = 62 }

</bundles_post_ra>
